<compile_context>
chip_gen: v6e
topology: v6e:2x2x1
jax: 0.10.0
libtpu: 0.0.40
codegen_flags: <defaults>
</compile_context>

<pallas_src>
import math

import jax
import jax.numpy as jnp
from jax.experimental import pallas as pl
from jax.experimental.pallas import tpu as pltpu


def _round_up(x, m):
    return (x + m - 1) // m * m


def _pick_node_tile(n):
    """Largest tile in {1024, 512, 256, 128} that minimizes padded N (ties -> larger)."""
    best = None
    for t in (1024, 512, 256, 128):
        npad = _round_up(n, t)
        key = (npad, -t)
        if best is None or key < best[0]:
            best = (key, t, npad)
    return best[1], best[2]


def _pick_tn(f_out_pad, tile, itemsize, budget_bytes=26 * 1024 * 1024):
    """Widest output tile (ideally f_out_pad, so adj streams once) within the VMEM budget."""
    for cand in sorted({f_out_pad, 1024, 512, 256, 128}, reverse=True):
        if cand > f_out_pad or f_out_pad % cand != 0:
            continue
        need = (2 * tile * tile * itemsize    # adj tile, double-buffered
                + 2 * tile * cand * itemsize  # sxw tile, double-buffered
                + 2 * tile * cand * 4         # out tile (f32), double-buffered
                + tile * cand * 4)            # f32 accumulator scratch
        if need <= budget_bytes:
            return cand
    return 128


# ------------------- kernel 1: sxw = dinv * (X @ W) (row-tiled, bf16 out) -------------------
def xw_scale_kernel(x_ref, w_ref, dinv_ref, o_ref):
    xw = jnp.dot(x_ref[...], w_ref[...], preferred_element_type=jnp.float32)
    o_ref[...] = (dinv_ref[...] * xw).astype(o_ref.dtype)


# ------- kernel 2: out = relu(dinv_i * sum_k A_hat^T[i, k] @ sxw[k] + b)  (bf16 x bf16) -------
def aggregate_kernel(adjt_ref, sxw_ref, dinv_ref, b_ref, o_ref, acc_ref):
    k = pl.program_id(2)

    @pl.when(k == 0)
    def _():
        acc_ref[...] = jnp.zeros_like(acc_ref)

    # adjt tile is (target rows, source cols) of (A + I_selfloop)^T, already in bf16;
    # sxw tile is bf16 -> native bf16 MXU matmul with f32 accumulation.
    acc_ref[...] += jnp.dot(adjt_ref[...], sxw_ref[...],
                            preferred_element_type=jnp.float32)

    @pl.when(k == pl.num_programs(2) - 1)
    def _():
        # Target-side dinv scaling, bias, ReLU fused into the epilogue.
        out = dinv_ref[...] * acc_ref[...] + b_ref[...]
        # F.dropout(p, training=False) is the identity at inference.
        # TODO(synk): training-mode dropout (Bernoulli mask + 1/(1-p) scaling) not emitted.
        o_ref[...] = jnp.maximum(out, 0.0).astype(o_ref.dtype)


def gcn_layer(x, adj, weight, bias, *, compute_dtype=jnp.bfloat16):
    """x: [N, F_in], adj: [N, N] dense, weight: [F_in, F_out], bias: [F_out] -> [N, F_out].

    Both the adjacency and the pre-scaled features sxw are streamed through the aggregation
    matmul in `compute_dtype` (bf16 default: exact for 0/1 edge weights, ~1e-3 relative
    feature error, half the HBM traffic). Pass jnp.float32 for exact weighted graphs.
    Degree / dinv normalization is always computed in f32.
    """
    n, f_in = x.shape
    f_out = weight.shape[1]
    itemsize = jnp.dtype(compute_dtype).itemsize

    x = x.astype(jnp.float32)
    adj_f32 = adj.astype(jnp.float32)
    weight = weight.astype(jnp.float32)
    bias = bias.astype(jnp.float32)

    # --- gcn_norm scalars, hoisted out of the kernels (f32, computed once) ---
    diag = jnp.diagonal(adj_f32)
    selfw = jnp.where(diag == 0.0, 1.0, 0.0).astype(jnp.float32)   # added self-loop weight
    deg = jnp.sum(adj_f32, axis=0) + selfw                         # target-side degree incl. self-loops
    dinv = jnp.where(deg > 0.0, jax.lax.rsqrt(deg), 0.0)

    # --- tile sizes / padding (lane-dense output, (8,128)-aligned adj tiles) ---
    f_out_pad = _round_up(f_out, 128)
    tile, n_pad = _pick_node_tile(n)
    tm = tk = tile
    tn = _pick_tn(f_out_pad, tile, itemsize)

    # Fold self-loops into the adjacency diagonal and pre-transpose; XLA fuses the
    # transpose + pad + cast into the single N^2 copy the wrapper already makes.
    a_hat_t = adj_f32.T + jnp.diag(selfw)
    if n_pad != n:
        a_hat_t = jnp.pad(a_hat_t, ((0, n_pad - n), (0, n_pad - n)))
        x = jnp.pad(x, ((0, n_pad - n), (0, 0)))
        dinv = jnp.pad(dinv, (0, n_pad - n))
    adjt_p = a_hat_t.astype(compute_dtype)
    dinv_p = dinv.reshape(n_pad, 1)
    if f_out_pad != f_out:
        weight = jnp.pad(weight, ((0, 0), (0, f_out_pad - f_out)))
        bias = jnp.pad(bias, (0, f_out_pad - f_out))
    b_p = bias.reshape(1, f_out_pad)

    # --- kernel 1: sxw = dinv * (X @ W), tiled over node rows, emitted in compute_dtype ---
    sxw = pl.pallas_call(
        xw_scale_kernel,
        out_shape=jax.ShapeDtypeStruct((n_pad, f_out_pad), compute_dtype),
        grid=(n_pad // tm,),
        in_specs=[
            pl.BlockSpec((tm, f_in), lambda i: (i, 0)),
            pl.BlockSpec((f_in, f_out_pad), lambda i: (0, 0)),
            pl.BlockSpec((tm, 1), lambda i: (i, 0)),
        ],
        out_specs=pl.BlockSpec((tm, f_out_pad), lambda i: (i, 0)),
        compiler_params=pltpu.CompilerParams(dimension_semantics=("parallel",)),
    )(x, weight, dinv_p)

    # --- kernel 2: tiled (i, j, k) aggregation with a VMEM f32 accumulator over k ---
    i_blocks = n_pad // tm
    j_blocks = f_out_pad // tn
    cost = pl.CostEstimate(
        flops=2 * n_pad * n_pad * f_out_pad,
        transcendentals=0,
        bytes_accessed=(n_pad * n_pad * itemsize * j_blocks       # adj stream (once if tn==f_out_pad)
                        + n_pad * f_out_pad * itemsize * i_blocks  # sxw re-read per row tile
                        + n_pad * f_out_pad * 4),                  # f32 output write
    )
    out_p = pl.pallas_call(
        aggregate_kernel,
        out_shape=jax.ShapeDtypeStruct((n_pad, f_out_pad), jnp.float32),
        grid=(i_blocks, j_blocks, n_pad // tk),
        in_specs=[
            pl.BlockSpec((tm, tk), lambda i, j, k: (i, k)),   # A_hat^T (target, source) tile
            pl.BlockSpec((tk, tn), lambda i, j, k: (k, j)),   # sxw at source rows (bf16)
            pl.BlockSpec((tm, 1), lambda i, j, k: (i, 0)),    # dinv at target rows
            pl.BlockSpec((1, tn), lambda i, j, k: (0, j)),    # bias
        ],
        out_specs=pl.BlockSpec((tm, tn), lambda i, j, k: (i, j)),
        scratch_shapes=[pltpu.VMEM((tm, tn), jnp.float32)],
        compiler_params=pltpu.CompilerParams(
            dimension_semantics=("parallel", "parallel", "arbitrary"),
            vmem_limit_bytes=48 * 1024 * 1024),                # tiles sized for <=26 MiB actual use
        cost_estimate=cost,
    )(adjt_p, sxw, dinv_p, b_p)

    return out_p[:n, :f_out]


if __name__ == "__main__":
    # Small shapes: N=256 nodes, F_in=16, F_out=32.
    N, F_IN, F_OUT = 256, 16, 32
    key = jax.random.PRNGKey(0)
    kx, kadj, kw = jax.random.split(key, 3)

    # Node features.
    x = jax.random.normal(kx, (N, F_IN), dtype=jnp.float32)

    # Random symmetric binary adjacency with zero diagonal (dense edge_index input).
    a = (jax.random.uniform(kadj, (N, N)) > 0.9).astype(jnp.float32)
    adj = jnp.triu(a, 1)
    adj = adj + adj.T

    # GCNConv parameters: glorot-uniform weight, small nonzero bias to exercise the epilogue.
    limit = math.sqrt(6.0 / (F_IN + F_OUT))
    weight = jax.random.uniform(kw, (F_IN, F_OUT), minval=-limit, maxval=limit,
                                dtype=jnp.float32)
    bias = jnp.full((F_OUT,), 0.01, dtype=jnp.float32)

    out = gcn_layer(x, adj, weight, bias)
    out = jax.block_until_ready(out)

    # Pure-JAX f32 reference with identical inference semantics.
    diag = jnp.diagonal(adj)
    selfw = jnp.where(diag == 0.0, 1.0, 0.0)
    a_hat = adj + jnp.diag(selfw)
    deg = jnp.sum(a_hat, axis=0)
    dinv = jnp.where(deg > 0.0, jax.lax.rsqrt(deg), 0.0)
    a_norm = a_hat * dinv[None, :] * dinv[:, None]
    ref = jnp.maximum(a_norm.T @ (x @ weight) + bias, 0.0)

    assert out.shape == (N, F_OUT)
    assert bool(jnp.all(jnp.isfinite(out)))
    assert bool(jnp.all(out >= 0.0))
    # Tolerance loosened vs. the f32 version: sxw is streamed in bf16 (~1e-3 relative).
    assert bool(jnp.allclose(out, ref, rtol=2e-2, atol=2e-2)), \
        float(jnp.max(jnp.abs(out - ref)))
    print("KERNEL_OK")
</pallas_src>

<mosaic_0001>
module attributes {stable_mosaic.version = 11 : i64} {
  func.func @xw_scale_kernel(%arg0: i32, %arg1: memref<256x16xf32, #tpu.memory_space<vmem>>, %arg2: memref<16x128xf32, #tpu.memory_space<vmem>>, %arg3: memref<256x1xf32, #tpu.memory_space<vmem>>, %arg4: memref<256x128xbf16, #tpu.memory_space<vmem>>) attributes {dimension_semantics = [#tpu.dimension_semantics<parallel>], iteration_bounds = array<i64: 1>, scalar_prefetch = 0 : i64, scratch_operands = 0 : i64, tpu.core_type = #tpu.core_type<tc>, window_params = [{transform_indices = @transform_0, window_bounds = array<i64: 256, 16>}, {pipeline_mode = #tpu.pipeline_mode<synchronous>, transform_indices = @transform_1, window_bounds = array<i64: 16, 128>}, {transform_indices = @transform_2, window_bounds = array<i64: 256, 1>}, {transform_indices = @transform_3, window_bounds = array<i64: 256, 128>}]} {
    %c0 = arith.constant 0 : index
    %c0_0 = arith.constant 0 : index
    %0 = vector.load %arg1[%c0, %c0_0] : memref<256x16xf32, #tpu.memory_space<vmem>>, vector<256x16xf32>
    %c0_1 = arith.constant 0 : index
    %c0_2 = arith.constant 0 : index
    %1 = vector.load %arg2[%c0_1, %c0_2] : memref<16x128xf32, #tpu.memory_space<vmem>>, vector<16x128xf32>
    %cst = arith.constant dense<0.000000e+00> : vector<256x128xf32>
    %2 = tpu.matmul %0, %1, %cst {dimension_numbers = #tpu.dot_dimension_numbers<[1], [0], [0], [1], [0, 0, 1, 1], [], []>} : vector<256x16xf32>, vector<16x128xf32>, vector<256x128xf32> -> vector<256x128xf32>
    %c0_3 = arith.constant 0 : index
    %c0_4 = arith.constant 0 : index
    %3 = vector.load %arg3[%c0_3, %c0_4] : memref<256x1xf32, #tpu.memory_space<vmem>>, vector<256x1xf32>
    %4 = vector.broadcast %3 : vector<256x1xf32> to vector<256x128xf32>
    %5 = arith.mulf %4, %2 : vector<256x128xf32>
    %6 = arith.truncf %5 : vector<256x128xf32> to vector<256x128xbf16>
    %c0_5 = arith.constant 0 : index
    %c0_6 = arith.constant 0 : index
    %7 = vector.load %arg4[%c0_5, %c0_6] : memref<256x128xbf16, #tpu.memory_space<vmem>>, vector<256x128xbf16>
    tpu.vector_store %arg4[%c0_5, %c0_6], %6 {strides = array<i32>} : memref<256x128xbf16, #tpu.memory_space<vmem>>, vector<256x128xbf16>,
    return
  }
  func.func @transform_0(%arg0: i32) -> (i32, i32) {
    %c0_i32 = arith.constant 0 : i32
    %c0_i32_0 = arith.constant 0 : i32
    return %arg0, %c0_i32 : i32, i32
  }
  func.func @transform_1(%arg0: i32) -> (i32, i32) {
    %c0_i32 = arith.constant 0 : i32
    %c0_i32_0 = arith.constant 0 : i32
    %c0_i32_1 = arith.constant 0 : i32
    return %c0_i32, %c0_i32_0 : i32, i32
  }
  func.func @transform_2(%arg0: i32) -> (i32, i32) {
    %c0_i32 = arith.constant 0 : i32
    %c0_i32_0 = arith.constant 0 : i32
    return %arg0, %c0_i32 : i32, i32
  }
  func.func @transform_3(%arg0: i32) -> (i32, i32) {
    %c0_i32 = arith.constant 0 : i32
    %c0_i32_0 = arith.constant 0 : i32
    return %arg0, %c0_i32 : i32, i32
  }
}

</mosaic_0001>

<bundles_post_ra>
// kernel: tpu_custom_call.1
= control target key start
LH: loop header
LB: loop body
LE: loop exit
PB: predicated region body
PF: predicated region fallthrough
CT: control target
= control target key end

     0   :  { %v1080_v3 = vmov 0   ;;  %vm49_vm0 = vcmask 130048   ;;  %s1361_s0 = inlined_call_operand.vmem [shape: f32[256,16], index: 0, kind: input, shape index: {}]   ;;  %s1362_s1 = inlined_call_operand.vmem [shape: f32[16,128], index: 1, kind: input, shape index: {}]   ;;  %s1363_s2 = inlined_call_operand.vmem [shape: f32[256,1], index: 2, kind: input, shape index: {}]   ;;  %s1364_s3 = inlined_call_operand.hbm [shape: bf16[256,128], index: 3, kind: output, shape index: {}]  }
   0x1   :  { %v48_v0 = vld [vmem:[%s1362_s1 + $0x8] sm:$0xff]  ;;  %v373_v1 = vld [vmem:[%s1363_s2 + $0x10] sm:$0xff]  ;;  %v371_v2 = vld [vmem:[%s1363_s2] sm:$0xff]  ;;  %1057 = vset.pattern.permute.xlu1 %v1080_v3  ;;  %1056 = vset.pattern.permute.xlu0 %v1080_v3 }
   0x2   :  { %996 = vmatprep.subr.mxu0 %v48_v0  ;;  %1048 = vmatprep.subr.mxu1 %v48_v0  ;;  %v47_v4 = vld [vmem:[%s1362_s1] sm:$0xff]  ;;  %v16_v7 = vld [vmem:[%s1361_s0 + $0x8] sm:$0xff]  ;;  %v374_v9 = vld [vmem:[%s1363_s2 + $0x18] sm:$0xff] }
   0x3   :  { %415 = vperm.xlu1 %1057, %v373_v1   ;;  %405 = vperm.xlu0 %1056, %v371_v2   ;;  %v15_v5 = vld [vmem:[%s1361_s0] sm:$0xff]  ;;  %v32_v8 = vld [vmem:[%s1361_s0 + $0x88] sm:$0xff]  ;;  %v17_v11 = vld [vmem:[%s1361_s0 + $0x10] sm:$0xff] }
   0x4   :  { %997 = vmatpush3.msra.mxu0 %v48_v0  ;;  %1050 = vmatpush3.msra.mxu1 %v48_v0  ;;  %v31_v6 = vld [vmem:[%s1361_s0 + $0x80] sm:$0xff]  ;;  %v372_v10 = vld [vmem:[%s1363_s2 + $0x8] sm:$0xff]  ;;  %v33_v12 = vld [vmem:[%s1361_s0 + $0x90] sm:$0xff] }
   0x5   :  { %998 = vmatprep.subr.mxu0 %v47_v4  ;;  %1049 = vmatprep.subr.mxu1 %v47_v4  ;;  %v18_v13 = vld [vmem:[%s1361_s0 + $0x18] sm:$0xff]  ;;  %v376_v15 = vld [vmem:[%s1363_s2 + $0x28] sm:$0xff]  ;;  %v375_v16 = vld [vmem:[%s1363_s2 + $0x20] sm:$0xff] }
   0x6   :  { %999 = vmatpush3.msra.mxu0 %v47_v4  ;;  %1051 = vmatpush3.msra.mxu1 %v47_v4  ;;  %v34_v14 = vld [vmem:[%s1361_s0 + $0x98] sm:$0xff]  ;;  %v19_v17 = vld [vmem:[%s1361_s0 + $0x20] sm:$0xff]  ;;  %v20_v19 = vld [vmem:[%s1361_s0 + $0x28] sm:$0xff] }
   0x7   :  { %1000 = vmatprep.mubr.msk.f32.mxu0 %vm49_vm0, %v15_v5  ;;  %1024 = vmatprep.mubr.msk.f32.mxu1 %vm49_vm0, %v31_v6  ;;  %v35_v18 = vld [vmem:[%s1361_s0 + $0xa0] sm:$0xff]  ;;  %v36_v20 = vld [vmem:[%s1361_s0 + $0xa8] sm:$0xff]  ;;  %v378_v21 = vld [vmem:[%s1363_s2 + $0x38] sm:$0xff] }
   0x8   :  { %1001 = vmatmul.mubr.msk.f32.vlgmr.msra.gmra.mxu0 %vm49_vm0, %v16_v7  ;;  %1025 = vmatmul.mubr.msk.f32.vlgmr.msra.gmra.mxu1 %vm49_vm0, %v32_v8  ;;  %v377_v22 = vld [vmem:[%s1363_s2 + $0x30] sm:$0xff]  ;;  %v22_v25 = vld [vmem:[%s1361_s0 + $0x38] sm:$0xff]  ;;  %v380_v27 = vld [vmem:[%s1363_s2 + $0x48] sm:$0xff] }
   0x9   :  { %420 = vperm.xlu1 %1057, %v374_v9   ;;  %410 = vperm.xlu0 %1056, %v372_v10   ;;  %v21_v23 = vld [vmem:[%s1361_s0 + $0x30] sm:$0xff]  ;;  %v38_v26 = vld [vmem:[%s1361_s0 + $0xb8] sm:$0xff]  ;;  %v379_v28 = vld [vmem:[%s1363_s2 + $0x40] sm:$0xff] }
   0xa   :  { %1003 = vmatprep.mubr.msk.f32.mxu0 %vm49_vm0, %v17_v11  ;;  %1027 = vmatprep.mubr.msk.f32.mxu1 %vm49_vm0, %v33_v12  ;;  %v37_v24 = vld [vmem:[%s1361_s0 + $0xb0] sm:$0xff]  ;;  %v23_v29 = vld [vmem:[%s1361_s0 + $0x40] sm:$0xff]  ;;  %v24_v31 = vld [vmem:[%s1361_s0 + $0x48] sm:$0xff] }
   0xb   :  { %v39_v30 = vld [vmem:[%s1361_s0 + $0xc0] sm:$0xff]  ;;  %v40_v32 = vld [vmem:[%s1361_s0 + $0xc8] sm:$0xff]  ;;  %v382_v33 = vld [vmem:[%s1363_s2 + $0x58] sm:$0xff] }
   0xc   :  { %1004 = vmatmul.mubr.msk.f32.gmra.mxu0 %vm49_vm0, %v18_v13  ;;  %1028 = vmatmul.mubr.msk.f32.gmra.mxu1 %vm49_vm0, %v34_v14  ;;  %v381_v34 = vld [vmem:[%s1363_s2 + $0x50] sm:$0xff] }
   0xd   :  { %430 = vperm.xlu1 %1057, %v376_v15   ;;  %425 = vperm.xlu0 %1056, %v375_v16  }
   0xe   :  { %1006 = vmatprep.mubr.msk.f32.mxu0 %vm49_vm0, %v19_v17  ;;  %1030 = vmatprep.mubr.msk.f32.mxu1 %vm49_vm0, %v35_v18 }
  0x10   :  { %1007 = vmatmul.mubr.msk.f32.gmra.mxu0 %vm49_vm0, %v20_v19  ;;  %1031 = vmatmul.mubr.msk.f32.gmra.mxu1 %vm49_vm0, %v36_v20 }
  0x11   :  { %440 = vperm.xlu1 %1057, %v378_v21   ;;  %435 = vperm.xlu0 %1056, %v377_v22  }
  0x12   :  { %1009 = vmatprep.mubr.msk.f32.mxu0 %vm49_vm0, %v21_v23  ;;  %1033 = vmatprep.mubr.msk.f32.mxu1 %vm49_vm0, %v37_v24 }
  0x14   :  { %1010 = vmatmul.mubr.msk.f32.gmra.mxu0 %vm49_vm0, %v22_v25  ;;  %1034 = vmatmul.mubr.msk.f32.gmra.mxu1 %vm49_vm0, %v38_v26 }
  0x15   :  { %450 = vperm.xlu1 %1057, %v380_v27   ;;  %445 = vperm.xlu0 %1056, %v379_v28  }
  0x16   :  { %1012 = vmatprep.mubr.msk.f32.mxu0 %vm49_vm0, %v23_v29  ;;  %1036 = vmatprep.mubr.msk.f32.mxu1 %vm49_vm0, %v39_v30 }
  0x17   :  { %8 = vsyncpa [#allocation3], 0  ;;  %v25_v35 = vld [vmem:[%s1361_s0 + $0x50] sm:$0xff]  ;;  %v26_v37 = vld [vmem:[%s1361_s0 + $0x58] sm:$0xff] }
  0x18   :  { %v41_v36 = vld [vmem:[%s1361_s0 + $0xd0] sm:$0xff]  ;;  %1013 = vmatmul.mubr.msk.f32.gmra.mxu0 %vm49_vm0, %v24_v31  ;;  %1037 = vmatmul.mubr.msk.f32.gmra.mxu1 %vm49_vm0, %v40_v32  ;;  %v42_v38 = vld [vmem:[%s1361_s0 + $0xd8] sm:$0xff]  ;;  %v384_v39 = vld [vmem:[%s1363_s2 + $0x68] sm:$0xff] }
  0x19   :  { %460 = vperm.xlu1 %1057, %v382_v33   ;;  %455 = vperm.xlu0 %1056, %v381_v34   ;;  %v383_v40 = vld [vmem:[%s1363_s2 + $0x60] sm:$0xff]  ;;  %v28_v43 = vld [vmem:[%s1361_s0 + $0x68] sm:$0xff]  ;;  %v386_v45 = vld [vmem:[%s1363_s2 + $0x78] sm:$0xff] }
  0x1a   :  { %1015 = vmatprep.mubr.msk.f32.mxu0 %vm49_vm0, %v25_v35  ;;  %1039 = vmatprep.mubr.msk.f32.mxu1 %vm49_vm0, %v41_v36  ;;  %v27_v41 = vld [vmem:[%s1361_s0 + $0x60] sm:$0xff]  ;;  %v44_v44 = vld [vmem:[%s1361_s0 + $0xe8] sm:$0xff]  ;;  %v385_v46 = vld [vmem:[%s1363_s2 + $0x70] sm:$0xff] }
  0x1b   :  { %v43_v42 = vld [vmem:[%s1361_s0 + $0xe0] sm:$0xff]  ;;  %v29_v47 = vld [vmem:[%s1361_s0 + $0x70] sm:$0xff]  ;;  %v30_v49 = vld [vmem:[%s1361_s0 + $0x78] sm:$0xff] }
  0x1c   :  { %1016 = vmatmul.mubr.msk.f32.gmra.mxu0 %vm49_vm0, %v26_v37  ;;  %1040 = vmatmul.mubr.msk.f32.gmra.mxu1 %vm49_vm0, %v42_v38  ;;  %v45_v48 = vld [vmem:[%s1361_s0 + $0xf0] sm:$0xff]  ;;  %v46_v50 = vld [vmem:[%s1361_s0 + $0xf8] sm:$0xff]  ;;  %v388_v51 = vld [vmem:[%s1363_s2 + $0x88] sm:$0xff] }
  0x1d   :  { %470 = vperm.xlu1 %1057, %v384_v39   ;;  %465 = vperm.xlu0 %1056, %v383_v40   ;;  %v387_v52 = vld [vmem:[%s1363_s2 + $0x80] sm:$0xff]  ;;  %v390_v53 = vld [vmem:[%s1363_s2 + $0x98] sm:$0xff]  ;;  %v389_v54 = vld [vmem:[%s1363_s2 + $0x90] sm:$0xff] }
  0x1e   :  { %1018 = vmatprep.mubr.msk.f32.mxu0 %vm49_vm0, %v27_v41  ;;  %1042 = vmatprep.mubr.msk.f32.mxu1 %vm49_vm0, %v43_v42  ;;  %v392_v55 = vld [vmem:[%s1363_s2 + $0xa8] sm:$0xff]  ;;  %v391_v56 = vld [vmem:[%s1363_s2 + $0xa0] sm:$0xff]  ;;  %v394_v57 = vld [vmem:[%s1363_s2 + $0xb8] sm:$0xff] }
  0x1f   :  { %v393_v58 = vld [vmem:[%s1363_s2 + $0xb0] sm:$0xff]  ;;  %v396_v59 = vld [vmem:[%s1363_s2 + $0xc8] sm:$0xff]  ;;  %v395_v60 = vld [vmem:[%s1363_s2 + $0xc0] sm:$0xff] }
  0x20   :  { %1019 = vmatmul.mubr.msk.f32.gmra.mxu0 %vm49_vm0, %v28_v43  ;;  %1043 = vmatmul.mubr.msk.f32.gmra.mxu1 %vm49_vm0, %v44_v44  ;;  %v398_v61 = vld [vmem:[%s1363_s2 + $0xd8] sm:$0xff]  ;;  %v397_v62 = vld [vmem:[%s1363_s2 + $0xd0] sm:$0xff]  ;;  %v400_v63 = vld [vmem:[%s1363_s2 + $0xe8] sm:$0xff] }
  0x21   :  { %480 = vperm.xlu1 %1057, %v386_v45   ;;  %475 = vperm.xlu0 %1056, %v385_v46   ;;  %v399_v0 = vld [vmem:[%s1363_s2 + $0xe0] sm:$0xff]  ;;  %v402_v1 = vld [vmem:[%s1363_s2 + $0xf8] sm:$0xff]  ;;  %v401_v2 = vld [vmem:[%s1363_s2 + $0xf0] sm:$0xff]  ;;  %s1081_s2 = smov [#allocation2]  }
  0x22   :  { %1021 = vmatprep.mubr.msk.f32.mxu0 %vm49_vm0, %v29_v47  ;;  %1045 = vmatprep.mubr.msk.f32.mxu1 %vm49_vm0, %v45_v48  ;;  %s760_s30 = sshll.u32 %s1081_s2, 4  ;;  %s761_s30 = int_to_ptr.vmem [resolvable:$true] %s760_s30 }
  0x23   :  { %s1058_s4 = scalar_lea.vmem %s761_s30, 2048  ;;  %p1063_p1 = scmp.lt.s32.totalorder %s761_s30, %s761_s30 }
  0x24   :  { %1022 = vmatmul.mubr.msk.f32.gmra.mxu0 %vm49_vm0, %v30_v49  ;;  %1046 = vmatmul.mubr.msk.f32.gmra.mxu1 %vm49_vm0, %v46_v50  ;;  %p1059_p0 = scmp.ne.s32.totalorder %s761_s30, %s1058_s4  ;;  %p1064_p2 = scmp.lt.s32.totalorder %s1058_s4, %s1058_s4 }
  0x25   :  { %490 = vperm.xlu1 %1057, %v388_v51   ;;  %485 = vperm.xlu0 %1056, %v387_v52  }
  0x26   :  { %p1065_p3 = por %p1064_p2, %p1063_p1 }
  0x28   :  { %p1066_p4 = pnand %p1065_p3, %p1059_p0 }
  0x29   :  { %500 = vperm.xlu1 %1057, %v390_v53   ;;  %495 = vperm.xlu0 %1056, %v389_v54  }
  0x2d   :  { %510 = vperm.xlu1 %1057, %v392_v55   ;;  %505 = vperm.xlu0 %1056, %v391_v56  }
  0x31   :  { %520 = vperm.xlu1 %1057, %v394_v57   ;;  %515 = vperm.xlu0 %1056, %v393_v58  }
  0x35   :  { %530 = vperm.xlu1 %1057, %v396_v59   ;;  %525 = vperm.xlu0 %1056, %v395_v60  }
  0x39   :  { %540 = vperm.xlu1 %1057, %v398_v61   ;;  %535 = vperm.xlu0 %1056, %v397_v62  }
  0x3d   :  { %550 = vperm.xlu1 %1057, %v400_v63   ;;  %545 = vperm.xlu0 %1056, %v399_v0  }
  0x41   :  { %560 = vperm.xlu1 %1057, %v402_v1   ;;  %555 = vperm.xlu0 %1056, %v401_v2  }
  0x7e   :  { %v416_v3 = vpop.permute.xlu1 %415  ;;  %v406_v4 = vpop.permute.xlu0 %405 }
  0x84   :  { %v421_v5 = vpop.permute.xlu1 %420  ;;  %v411_v6 = vpop.permute.xlu0 %410 }
  0x88   :  { %v431_v7 = vpop.permute.xlu1 %430  ;;  %v426_v8 = vpop.permute.xlu0 %425 }
  0x8c   :  { %v441_v9 = vpop.permute.xlu1 %440  ;;  %v436_v10 = vpop.permute.xlu0 %435 }
  0x90   :  { %v1334_v11 = vpop.permute.xlu1 %450  ;;  %v1336_v12 = vpop.permute.xlu0 %445 }
  0x94   :  { %v1338_v13 = vpop.permute.xlu1 %460  ;;  %v1340_v14 = vpop.permute.xlu0 %455 }
  0x98   :  { %v1342_v15 = vpop.permute.xlu1 %470  ;;  %v1344_v16 = vpop.permute.xlu0 %465 }
  0x9c   :  { %v1346_v17 = vpop.permute.xlu1 %480  ;;  %v1348_v18 = vpop.permute.xlu0 %475 }
  0xa0   :  { %v491_v19 = vpop.permute.xlu1 %490  ;;  %v486_v20 = vpop.permute.xlu0 %485 }
  0xa4   :  { %v501_v21 = vpop.permute.xlu1 %500  ;;  %v496_v22 = vpop.permute.xlu0 %495 }
  0xa8   :  { %v511_v23 = vpop.permute.xlu1 %510  ;;  %v506_v24 = vpop.permute.xlu0 %505 }
  0xac   :  { %v521_v35 = vpop.permute.xlu1 %520  ;;  %v516_v36 = vpop.permute.xlu0 %515 }
  0xb0   :  { %v531_v51 = vpop.permute.xlu1 %530  ;;  %v526_v52 = vpop.permute.xlu0 %525 }
  0xc8   :  { %v1002_v25 = vpop.f32.mrf.mxu0  ;;  %v1026_v26 = vpop.f32.mrf.mxu1 }
  0xc9   :  { %v564_v29 = vmul.f32 %v1002_v25, %v411_v6  ;;  %v580_v30 = vmul.f32 %v1026_v26, %v491_v19  ;;  %v536_v6 = vpop.permute.xlu0 %535 }
  0xca   :  { %v212_v27 = vpop.f32.mrf.mxu0  ;;  %v292_v28 = vpop.f32.mrf.mxu1 }
  0xcb   :  { %v563_v31 = vmul.f32 %v406_v4, %v212_v27  ;;  %v579_v32 = vmul.f32 %v486_v20, %v292_v28 }
  0xcc   :  { %v1005_v33 = vpop.f32.mrf.mxu0  ;;  %v1029_v34 = vpop.f32.mrf.mxu1 }
  0xcd   :  { %v870_v37 = vpack.c.bf16 %v564_v29, %v563_v31  ;;  %v910_v38 = vpack.c.bf16 %v580_v30, %v579_v32  ;;  %v566_v41 = vmul.f32 %v1005_v33, %v421_v5  ;;  %v582_v42 = vmul.f32 %v1029_v34, %v501_v21  ;;  %v541_v5 = vpop.permute.xlu1 %540  ;;  %v546_v30 = vpop.permute.xlu0 %545 }
  0xce   :  { %v222_v39 = vpop.f32.mrf.mxu0  ;;  %v302_v40 = vpop.f32.mrf.mxu1 }
  0xcf   :  { %871 = vst [vmem:[#allocation2] sm:$0xff] %v870_v37   ;;  %954 = vst [vmem:[#allocation2 + $0x40] sm:$0xff] %v910_v38   ;;  %v565_v43 = vmul.f32 %v416_v3, %v222_v39  ;;  %v581_v44 = vmul.f32 %v496_v22, %v302_v40 }
  0xd0   :  { %v1008_v45 = vpop.f32.mrf.mxu0  ;;  %v1032_v46 = vpop.f32.mrf.mxu1 }
  0xd1   :  { %v875_v47 = vpack.c.bf16 %v566_v41, %v565_v43  ;;  %v915_v48 = vpack.c.bf16 %v582_v42, %v581_v44  ;;  %v568_v53 = vmul.f32 %v1008_v45, %v431_v7  ;;  %v584_v54 = vmul.f32 %v1032_v46, %v511_v23  ;;  %v551_v29 = vpop.permute.xlu1 %550  ;;  %v556_v45 = vpop.permute.xlu0 %555 }
  0xd2   :  { %v232_v49 = vpop.f32.mrf.mxu0  ;;  %v312_v50 = vpop.f32.mrf.mxu1 }
  0xd3   :  { %947 = vst [vmem:[#allocation2 + $0x8] sm:$0xff] %v875_v47   ;;  %955 = vst [vmem:[#allocation2 + $0x48] sm:$0xff] %v915_v48   ;;  %v567_v55 = vmul.f32 %v426_v8, %v232_v49  ;;  %v583_v56 = vmul.f32 %v506_v24, %v312_v50 }
  0xd4   :  { %v1011_v57 = vpop.f32.mrf.mxu0  ;;  %v1035_v58 = vpop.f32.mrf.mxu1 }
  0xd5   :  { %v880_v59 = vpack.c.bf16 %v568_v53, %v567_v55  ;;  %v920_v60 = vpack.c.bf16 %v584_v54, %v583_v56  ;;  %v570_v63 = vmul.f32 %v1011_v57, %v441_v9  ;;  %v586_v0 = vmul.f32 %v1035_v58, %v521_v35  ;;  %v561_v44 = vpop.permute.xlu1 %560 }
  0xd6   :  { %v242_v61 = vpop.f32.mrf.mxu0  ;;  %v322_v62 = vpop.f32.mrf.mxu1 }
  0xd7   :  { %948 = vst [vmem:[#allocation2 + $0x10] sm:$0xff] %v880_v59   ;;  %956 = vst [vmem:[#allocation2 + $0x50] sm:$0xff] %v920_v60   ;;  %v569_v1 = vmul.f32 %v436_v10, %v242_v61  ;;  %v585_v2 = vmul.f32 %v516_v36, %v322_v62 }
  0xd8   :  { %v1014_v3 = vpop.f32.mrf.mxu0  ;;  %v1038_v4 = vpop.f32.mrf.mxu1 }
  0xd9   :  { %v885_v7 = vpack.c.bf16 %v570_v63, %v569_v1  ;;  %v925_v19 = vpack.c.bf16 %v586_v0, %v585_v2  ;;  %v572_v21 = vmul.f32 %v1014_v3, %v1334_v11  ;;  %v588_v22 = vmul.f32 %v1038_v4, %v531_v51 }
  0xda   :  { %v252_v8 = vpop.f32.mrf.mxu0  ;;  %v332_v20 = vpop.f32.mrf.mxu1 }
  0xdb   :  { %949 = vst [vmem:[#allocation2 + $0x18] sm:$0xff] %v885_v7   ;;  %957 = vst [vmem:[#allocation2 + $0x58] sm:$0xff] %v925_v19   ;;  %v571_v23 = vmul.f32 %v1336_v12, %v252_v8  ;;  %v587_v24 = vmul.f32 %v526_v52, %v332_v20 }
  0xdc   :  { %v1017_v9 = vpop.f32.mrf.mxu0  ;;  %v1041_v25 = vpop.f32.mrf.mxu1 }
  0xdd   :  { %v890_v10 = vpack.c.bf16 %v572_v21, %v571_v23  ;;  %v930_v26 = vpack.c.bf16 %v588_v22, %v587_v24  ;;  %v574_v31 = vmul.f32 %v1017_v9, %v1338_v13  ;;  %v590_v32 = vmul.f32 %v1041_v25, %v541_v5 }
  0xde   :  { %v262_v27 = vpop.f32.mrf.mxu0  ;;  %v342_v28 = vpop.f32.mrf.mxu1 }
  0xdf   :  { %950 = vst [vmem:[#allocation2 + $0x20] sm:$0xff] %v890_v10   ;;  %958 = vst [vmem:[#allocation2 + $0x60] sm:$0xff] %v930_v26   ;;  %v573_v33 = vmul.f32 %v1340_v14, %v262_v27  ;;  %v589_v11 = vmul.f32 %v536_v6, %v342_v28 }
  0xe0   :  { %v1020_v34 = vpop.f32.mrf.mxu0  ;;  %v1044_v35 = vpop.f32.mrf.mxu1 }
  0xe1   :  { %v895_v12 = vpack.c.bf16 %v574_v31, %v573_v33  ;;  %v935_v36 = vpack.c.bf16 %v590_v32, %v589_v11  ;;  %v576_v39 = vmul.f32 %v1020_v34, %v1342_v15  ;;  %v592_v40 = vmul.f32 %v1044_v35, %v551_v29 }
  0xe2   :  { %v272_v37 = vpop.f32.mrf.mxu0  ;;  %v352_v38 = vpop.f32.mrf.mxu1 }
  0xe3   :  { %951 = vst [vmem:[#allocation2 + $0x28] sm:$0xff] %v895_v12   ;;  %959 = vst [vmem:[#allocation2 + $0x68] sm:$0xff] %v935_v36   ;;  %v575_v41 = vmul.f32 %v1344_v16, %v272_v37  ;;  %v591_v42 = vmul.f32 %v546_v30, %v352_v38 }
  0xe4   :  { %v1023_v43 = vpop.f32.mrf.mxu0  ;;  %v1047_v13 = vpop.f32.mrf.mxu1 }
  0xe5   :  { %v900_v14 = vpack.c.bf16 %v576_v39, %v575_v41  ;;  %v940_v46 = vpack.c.bf16 %v592_v40, %v591_v42  ;;  %v578_v49 = vmul.f32 %v1023_v43, %v1346_v17  ;;  %v594_v50 = vmul.f32 %v1047_v13, %v561_v44 }
  0xe6   :  { %v282_v47 = vpop.f32.mrf.mxu0  ;;  %v362_v48 = vpop.f32.mrf.mxu1 }
  0xe7   :  { %952 = vst [vmem:[#allocation2 + $0x30] sm:$0xff] %v900_v14   ;;  %960 = vst [vmem:[#allocation2 + $0x70] sm:$0xff] %v940_v46   ;;  %v577_v15 = vmul.f32 %v1348_v18, %v282_v47  ;;  %v593_v51 = vmul.f32 %v556_v45, %v362_v48 }
  0xe9   :  { %v905_v16 = vpack.c.bf16 %v578_v49, %v577_v15  ;;  %v945_v52 = vpack.c.bf16 %v594_v50, %v593_v51 }
  0xeb   :  { %953 = vst [vmem:[#allocation2 + $0x38] sm:$0xff] %v905_v16   ;;  %961 = vst [vmem:[#allocation2 + $0x78] sm:$0xff] %v945_v52  }
  0xec   :  { %1069 = shalt.err (!%p1066_p4)
}
  0xed   :  { %s1082_s0 = smov 64   ;;  %s1083_s5 = smov 4  }
  0xee   :  { %766 = dma.vmem_to_hbm [thread:$0]  %s761_s30, 2048, %s1364_s3, [#allocation3], %s1082_s0, %s1082_s0, %s1083_s5  }
  0xef   :  { %1078 = dma.done.wait [#allocation3], 2048  }
  0xf0   :  { %1079 = vsyncadd [#allocation3], 4294965248 }
  0xf1   :  { %770 = vsyncpa [#allocation3], 1 }

</bundles_post_ra>
